<compile_context>
chip_gen: v7x
topology: tpu7x:2x2x1
jax: 0.10.0
libtpu: 0.0.40
codegen_flags: <defaults>
</compile_context>

<pallas_src>
import functools
import itertools

import numpy as np
import jax
import jax.numpy as jnp
from jax.experimental import pallas as pl
from jax.experimental.pallas import tpu as pltpu

cfg = {
    'num_classes': 2,
    'conv_output': ['conv_4', 'conv_5', 'extra_2', 'extra_3'],
    'feature_map_sizes': [96, 48, 24, 24, 24],
    'input_img_size': [768, 768],
    'box_height': [[18], [30], [46], [68]],
    'box_ratios': [[2, 4, 7, 11, 15, 20, 26], [0.5, 1, 2, 5, 9, 13, 16, 18, 20],
                   [1, 2, 5, 8, 10, 12, 15], [1, 2, 3, 5, 8], [1, 2, 3, 4]],
    'big_box': True,
    'box_height_large': [[24], [38], [56], [98]],
    'box_ratios_large': [[1, 2, 4, 7, 11, 15, 20], [0.5, 1, 3, 6, 9, 11, 13, 15, 17],
                         [1, 2, 4, 7, 9, 11, 14], [1, 2, 3, 5, 7], [1, 2, 3, 4]],
    'stride': [1, 1, 1, 1, 1],
    'loc_and_conf': [512, 512, 512, 256, 256],
    'variance': [0.1, 0.2], 'var_updater': 1, 'alpha': 1, 'alpha_updater': 1,
    'overlap_thresh': 0.45, 'clip': True, 'super_wide': 0.5, 'super_wide_coeff': 0.5,
}


def _round_up(x, m):
    return (x + m - 1) // m * m


# ----------------------------------------------------------------------------
# Tile selection (host-side, at trace/param-build time)
# ----------------------------------------------------------------------------
def _pick_m_tile(M):
    """Right-size the M tile: no padding to 128 for the tiny head layers."""
    Mp0 = _round_up(M, 8)
    if Mp0 <= 512:
        return Mp0, Mp0
    for t in (512, 384, 256, 128):
        if Mp0 % t == 0:
            return t, Mp0
    return 512, _round_up(Mp0, 512)


def _pick_k_tile(K):
    Kp0 = _round_up(K, 128)
    if Kp0 <= 1024:                       # single K step when it fits
        return Kp0, Kp0
    for t in (1024, 896, 768, 640, 512, 384, 256, 128):
        if Kp0 % t == 0:
            return t, Kp0
    return 512, _round_up(Kp0, 512)


def _pick_n_tile(N):
    Np0 = _round_up(N, 128)
    if Np0 <= 256:
        return Np0, Np0
    if Np0 % 256 == 0:
        return 256, Np0
    return 128, Np0


# ----------------------------------------------------------------------------
# Pallas kernels
# ----------------------------------------------------------------------------
def _mm_bias_act_kernel(x_ref, w_ref, b_ref, o_ref, acc_ref, *, relu):
    """Tiled bf16 matmul with f32 accumulation; bias folded into the k==0 init,
    optional ReLU + cast in the last-k epilogue."""
    k = pl.program_id(2)

    @pl.when(k == 0)
    def _():
        acc_ref[...] = jnp.broadcast_to(b_ref[...], acc_ref.shape)

    acc_ref[...] += jnp.dot(x_ref[...], w_ref[...],
                            preferred_element_type=jnp.float32)

    @pl.when(k == pl.num_programs(2) - 1)
    def _():
        y = acc_ref[...]
        if relu:
            y = jnp.maximum(y, 0.0)
        o_ref[...] = y.astype(o_ref.dtype)


def pallas_matmul_bias(x, w_p, b_p, n_valid, tk, tn, relu, out_dtype):
    """out = act(x @ W + b).

    x   : (M, K)   bf16 im2col patches (K may be < Kp; padded here if needed)
    w_p : (Kp, Np) bf16, pre-padded at parameter-build time
    b_p : (1, Np)  f32,  pre-padded at parameter-build time
    Returns (M, n_valid) in out_dtype.
    """
    M, K = x.shape
    Kp, Np = w_p.shape
    tm, Mp = _pick_m_tile(M)
    if Mp > M or Kp > K:
        x = jnp.pad(x, ((0, Mp - M), (0, Kp - K)))

    out = pl.pallas_call(
        functools.partial(_mm_bias_act_kernel, relu=relu),
        out_shape=jax.ShapeDtypeStruct((Mp, Np), out_dtype),
        grid_spec=pltpu.PrefetchScalarGridSpec(
            num_scalar_prefetch=0,
            grid=(Mp // tm, Np // tn, Kp // tk),
            in_specs=[
                pl.BlockSpec((tm, tk), lambda i, j, k: (i, k)),
                pl.BlockSpec((tk, tn), lambda i, j, k: (k, j)),
                pl.BlockSpec((1, tn), lambda i, j, k: (0, j)),
            ],
            out_specs=pl.BlockSpec((tm, tn), lambda i, j, k: (i, j)),
            scratch_shapes=[pltpu.VMEM((tm, tn), jnp.float32)],
        ),
        compiler_params=pltpu.CompilerParams(
            dimension_semantics=("parallel", "parallel", "arbitrary")),
    )(x, w_p, b_p)

    if Mp > M or Np > n_valid:
        out = out[:M, :n_valid]
    return out


def _maxpool_kernel(x_ref, o_ref):
    """x block: (1, rh, 2, Wo, 2*C) -> o block: (1, rh, Wo, C); 4-way max."""
    blk = x_ref[0].astype(jnp.float32)                    # (rh, 2, Wo, 2C)
    m = jnp.maximum(blk[:, 0, :, :], blk[:, 1, :, :])     # (rh, Wo, 2C)
    C = o_ref.shape[-1]
    o_ref[0] = jnp.maximum(m[:, :, :C], m[:, :, C:]).astype(o_ref.dtype)


def maxpool2x2(x):
    """2x2/stride-2 max pool (NHWC). All spatial dims here are even, so
    ceil_mode == floor_mode. Reads x exactly once (contiguous reshape, no
    materialized strided views)."""
    Nb, H, W, C = x.shape
    Ho, Wo = H // 2, W // 2
    xr = x.reshape(Nb, Ho, 2, Wo, 2 * C)                  # free (contiguous)

    # rows of output per block: largest divisor of Ho keeping the block <~2MiB
    bytes_per_row = 2 * Wo * 2 * C * x.dtype.itemsize
    rh_cap = max(1, (2 << 20) // max(1, bytes_per_row))
    rh = 1
    for cand in range(min(Ho, rh_cap), 0, -1):
        if Ho % cand == 0:
            rh = cand
            break

    return pl.pallas_call(
        _maxpool_kernel,
        out_shape=jax.ShapeDtypeStruct((Nb, Ho, Wo, C), x.dtype),
        grid_spec=pltpu.PrefetchScalarGridSpec(
            num_scalar_prefetch=0,
            grid=(Nb, Ho // rh),
            in_specs=[pl.BlockSpec((1, rh, 2, Wo, 2 * C),
                                   lambda n, i: (n, i, 0, 0, 0))],
            out_specs=pl.BlockSpec((1, rh, Wo, C), lambda n, i: (n, i, 0, 0)),
        ),
        compiler_params=pltpu.CompilerParams(
            dimension_semantics=("parallel", "parallel")),
    )(xr)


# ----------------------------------------------------------------------------
# Conv = im2col (bf16, JAX glue) + Pallas fused matmul
# ----------------------------------------------------------------------------
def conv2d(x, lyr):
    """x: (N,H,W,Cin) NHWC bf16; layer dict carries pre-padded bf16 weights."""
    Nb, H, W, Cin = x.shape
    k, s, p, d = lyr['ksize'], lyr['stride'], lyr['pad'], lyr['dil']
    xpad = jnp.pad(x, ((0, 0), (p, p), (p, p), (0, 0))) if p > 0 else x
    Hp, Wp = H + 2 * p, W + 2 * p
    Ho = (Hp - (k - 1) * d - 1) // s + 1
    Wo = (Wp - (k - 1) * d - 1) // s + 1

    if k == 1 and s == 1:
        patches = xpad                                    # 1x1 conv: no im2col
    else:
        # TODO(synk): the KxK taps are still materialized (bf16 im2col) before
        # the matmul; fully fusing tap accumulation into the Pallas grid would
        # remove this remaining HBM round trip.
        cols = []
        for kh in range(k):
            for kw in range(k):
                h0, w0 = kh * d, kw * d
                cols.append(xpad[:, h0:h0 + (Ho - 1) * s + 1:s,
                                 w0:w0 + (Wo - 1) * s + 1:s, :])
        patches = jnp.concatenate(cols, axis=-1)          # (N,Ho,Wo,K*K*Cin) bf16

    out = pallas_matmul_bias(
        patches.reshape(Nb * Ho * Wo, k * k * Cin),
        lyr['w'], lyr['b'], lyr['cout'], lyr['tk'], lyr['tn'],
        relu=lyr['relu'], out_dtype=lyr['out_dtype'])
    return out.reshape(Nb, Ho, Wo, lyr['cout'])


# ----------------------------------------------------------------------------
# Deterministic synthetic parameters (shapes follow SSD.__init__)
# ----------------------------------------------------------------------------
class _KeyGen:
    def __init__(self, seed):
        self.key = jax.random.PRNGKey(seed)

    def __call__(self):
        self.key, sub = jax.random.split(self.key)
        return sub


def _he_conv(key, kh, kw, cin, cout):
    k1, k2 = jax.random.split(key)
    w = jax.random.normal(k1, (kh, kw, cin, cout), jnp.float32) * np.sqrt(2.0 / (kh * kw * cin))
    b = jax.random.normal(k2, (cout,), jnp.float32) * 0.01
    return w, b


def _fold_bn(w, b, key, cout, eps=1e-5):
    kg, kb, km, kv = jax.random.split(key, 4)
    gamma = 1.0 + 0.1 * jax.random.normal(kg, (cout,), jnp.float32)
    beta = 0.1 * jax.random.normal(kb, (cout,), jnp.float32)
    mean = 0.1 * jax.random.normal(km, (cout,), jnp.float32)
    var = 1.0 + 0.1 * jax.random.uniform(kv, (cout,), jnp.float32)
    scale = gamma / jnp.sqrt(var + eps)
    return w * scale, (b - mean) * scale + beta


def _anchor_number(k):
    n = len(cfg['box_height'][k]) * len(cfg['box_ratios'][k])
    if cfg['big_box']:
        n += len(cfg['box_height_large'][k]) * len(cfg['box_ratios_large'][k])
    return n


def build_params(seed=0):
    kg = _KeyGen(seed)

    def conv(cin, cout, k, stride=1, pad=0, dil=1, bn=True, relu=True, out_f32=False):
        w, b = _he_conv(kg(), k, k, cin, cout)
        if bn:
            w, b = _fold_bn(w, b, kg(), cout)
        K, N = k * k * cin, cout
        tk, Kp = _pick_k_tile(K)
        tn, Np = _pick_n_tile(N)
        # Pre-pad + pre-cast weights/bias ONCE (no per-forward pads).
        w_p = jnp.pad(w.reshape(K, N), ((0, Kp - K), (0, Np - N))).astype(jnp.bfloat16)
        b_p = jnp.pad(b.reshape(1, N), ((0, 0), (0, Np - N))).astype(jnp.float32)
        return dict(type='conv', w=w_p, b=b_p, cout=N, ksize=k, stride=stride,
                    pad=pad, dil=dil, relu=relu, tk=tk, tn=tn,
                    out_dtype=jnp.float32 if out_f32 else jnp.bfloat16)

    POOL = dict(type='pool')

    backbone = [
        ('conv_1', [conv(3, 64, 3, pad=1), conv(64, 64, 3, pad=1)]),
        ('conv_2', [POOL, conv(64, 128, 3, pad=1), conv(128, 128, 3, pad=1)]),
        ('conv_3', [POOL, conv(128, 256, 3, pad=1), conv(256, 256, 3, pad=1),
                    conv(256, 256, 3, pad=1)]),
        ('conv_4', [POOL, conv(256, 512, 3, pad=1), conv(512, 512, 3, pad=1),
                    conv(512, 512, 3, pad=1)]),
        ('conv_5', [POOL, conv(512, 512, 3, pad=1), conv(512, 512, 3, pad=1),
                    conv(512, 512, 3, pad=1)]),
        ('extra_1', [conv(512, 512, 3, pad=3, dil=3), conv(512, 512, 1)]),
        ('extra_2', [conv(512, 256, 1), conv(256, 512, 3, stride=2, pad=1)]),
        ('extra_3', [conv(512, 256, 1), conv(256, 256, 3, pad=1)]),
        # extra_4 never executes: forward() breaks once all conv_output collected.
    ]

    loc_layers, conf_layers = [], []
    for i in range(len(cfg['conv_output'])):
        cin = cfg['loc_and_conf'][i]
        anchor = _anchor_number(i)
        s = cfg['stride'][i]
        # TODO(synk): omth_blocks.conv_block default batch_norm for the
        # activation=None head blocks is unknown; assumed no BN / no activation.
        loc_layers.append([
            conv(cin, cin, 3, pad=3, dil=3), conv(cin, cin, 1),               # BN+ReLU block
            conv(cin, cin, 3, pad=0, bn=False, relu=False),
            conv(cin, cin // 2, 1, pad=1, bn=False, relu=False),
            conv(cin // 2, anchor * 4, 3, stride=s, pad=1, bn=False, relu=False,
                 out_f32=True),
        ])
        conf_layers.append([
            conv(cin, cin, 3, pad=3, dil=3), conv(cin, cin, 1),               # BN+ReLU block
            conv(cin, cin, 1, pad=0, bn=False, relu=False),
            conv(cin, cin // 2, 3, pad=1, bn=False, relu=False),
            conv(cin // 2, anchor * 2, 3, stride=s, pad=1, bn=False, relu=False,
                 out_f32=True),
        ])
    return dict(backbone=backbone, loc=loc_layers, conf=conf_layers)


# ----------------------------------------------------------------------------
# Prior boxes (host-side scalar code, identical to SSD.create_prior)
# ----------------------------------------------------------------------------
def create_prior():
    mean = []
    input_size = cfg['input_img_size']
    for k in range(len(cfg['conv_output'])):
        h = w = cfg['feature_map_sizes'][k]
        h_stride = w_stride = cfg['stride'][k]
        for i, j in itertools.product(range(0, int(h), int(h_stride)),
                                      range(0, int(w), int(w_stride))):
            cx = (j + 0.5) / w
            cy = (i + 0.5) / h
            for height in cfg['box_height'][k]:
                s_k = height / input_size[0]
                for r in cfg['box_ratios'][k]:
                    mean += [cx, cy, s_k * r, s_k]
            if cfg['big_box']:
                for height in cfg['box_height_large'][k]:
                    s_k_big = height / input_size[0]
                    for r in cfg['box_ratios_large'][k]:
                        mean += [cx, cy, s_k_big * r, s_k_big]
    pb = np.asarray(mean, dtype=np.float32).reshape(-1, 4)
    if cfg['clip']:
        pb = np.clip(pb, 0.0, 1.0)
    return jnp.asarray(pb)


# ----------------------------------------------------------------------------
# Forward pass
# ----------------------------------------------------------------------------
def _apply_layer(x, lyr):
    if lyr['type'] == 'pool':
        return maxpool2x2(x)
    return conv2d(x, lyr)


def ssd_forward(x_nchw, params, prior, is_train=True):
    # PyTorch input is NCHW -> transpose to NHWC once, keep activations in bf16.
    x = jnp.transpose(x_nchw, (0, 2, 3, 1)).astype(jnp.bfloat16)

    conv_output = []
    for name, layers in params['backbone']:
        for lyr in layers:
            x = _apply_layer(x, lyr)
        if name in cfg['conv_output']:
            conv_output.append(x)
            if len(conv_output) == len(cfg['conv_output']):
                break

    locations, confidences = [], []
    for i, feat in enumerate(conv_output):
        loc = feat
        for lyr in params['loc'][i]:
            loc = _apply_layer(loc, lyr)
        N, H, W, C = loc.shape
        # NHWC is already the permute(0,2,3,1) layout of the PyTorch code.
        locations.append(loc.reshape(N, H * W * (C // 4), 4))

        conf = feat
        for lyr in params['conf'][i]:
            conf = _apply_layer(conf, lyr)
        N, H, W, C = conf.shape
        confidences.append(conf.reshape(N, H * W * (C // 2), cfg['num_classes']))

    locations = jnp.concatenate(locations, axis=1).astype(jnp.float32)
    confidences = jnp.concatenate(confidences, axis=1).astype(jnp.float32)
    if is_train:
        return [locations, confidences, prior]
    # eval path (softmax over classes) -- plain-JAX glue, not on the hot path
    return [locations, jax.nn.softmax(confidences, axis=-1), prior]


# ----------------------------------------------------------------------------
if __name__ == "__main__":
    key = jax.random.PRNGKey(0)
    # Small input (96x96 is the minimum that keeps every head conv valid:
    # extra_2/extra_3 feature maps become 3x3).
    x = jax.random.normal(key, (2, 3, 96, 96), jnp.float32)   # NCHW like PyTorch

    params = build_params(seed=0)
    prior = create_prior()

    locations, confidences, prior_out = ssd_forward(x, params, prior, is_train=True)
    jax.block_until_ready((locations, confidences, prior_out))

    # 12*12*14 + 6*6*18 + 3*3*14 + 3*3*10 = 2880 anchors for a 96x96 input.
    assert locations.shape == (2, 2880, 4), locations.shape
    assert confidences.shape == (2, 2880, 2), confidences.shape
    assert prior_out.shape == (184320, 4), prior_out.shape

    print("KERNEL_OK")
</pallas_src>

<mosaic_0001>
module attributes {stable_mosaic.version = 11 : i64} {
  func.func @_mm_bias_act_kernel(%arg0: i32, %arg1: i32, %arg2: i32, %arg3: memref<512x128xbf16, #tpu.memory_space<vmem>>, %arg4: memref<128x128xbf16, #tpu.memory_space<vmem>>, %arg5: memref<1x128xf32, #tpu.memory_space<vmem>>, %arg6: memref<512x128xbf16, #tpu.memory_space<vmem>>, %arg7: memref<512x128xf32, #tpu.memory_space<vmem>>) attributes {dimension_semantics = [#tpu.dimension_semantics<parallel>, #tpu.dimension_semantics<parallel>, #tpu.dimension_semantics<arbitrary>], iteration_bounds = array<i64: 36, 1, 1>, scalar_prefetch = 0 : i64, scratch_operands = 1 : i64, tpu.core_type = #tpu.core_type<tc>, window_params = [{transform_indices = @transform_0, window_bounds = array<i64: 512, 128>}, {transform_indices = @transform_1, window_bounds = array<i64: 128, 128>}, {transform_indices = @transform_2, window_bounds = array<i64: 1, 128>}, {transform_indices = @transform_3, window_bounds = array<i64: 512, 128>}]} {
    %c0_i32 = arith.constant 0 : i32
    %0 = arith.cmpi eq, %arg2, %c0_i32 : i32
    %1 = arith.extui %0 : i1 to i32
    %c0_i32_0 = arith.constant 0 : i32
    %2 = arith.cmpi ne, %1, %c0_i32_0 : i32
    scf.if %2 {
      %c0_10 = arith.constant 0 : index
      %c0_11 = arith.constant 0 : index
      %12 = vector.load %arg5[%c0_10, %c0_11] : memref<1x128xf32, #tpu.memory_space<vmem>>, vector<1x128xf32>
      %13 = vector.shape_cast %12 : vector<1x128xf32> to vector<1x128xf32>
      %14 = vector.broadcast %13 : vector<1x128xf32> to vector<512x128xf32>
      %c0_12 = arith.constant 0 : index
      %c0_13 = arith.constant 0 : index
      %15 = vector.load %arg7[%c0_12, %c0_13] : memref<512x128xf32, #tpu.memory_space<vmem>>, vector<512x128xf32>
      tpu.vector_store %arg7[%c0_12, %c0_13], %14 {strides = array<i32>} : memref<512x128xf32, #tpu.memory_space<vmem>>, vector<512x128xf32>,
    } else {
    }
    %c0 = arith.constant 0 : index
    %c0_1 = arith.constant 0 : index
    %3 = vector.load %arg7[%c0, %c0_1] : memref<512x128xf32, #tpu.memory_space<vmem>>, vector<512x128xf32>
    %c0_2 = arith.constant 0 : index
    %c0_3 = arith.constant 0 : index
    %4 = vector.load %arg3[%c0_2, %c0_3] : memref<512x128xbf16, #tpu.memory_space<vmem>>, vector<512x128xbf16>
    %c0_4 = arith.constant 0 : index
    %c0_5 = arith.constant 0 : index
    %5 = vector.load %arg4[%c0_4, %c0_5] : memref<128x128xbf16, #tpu.memory_space<vmem>>, vector<128x128xbf16>
    %cst = arith.constant dense<0.000000e+00> : vector<512x128xf32>
    %6 = tpu.matmul %4, %5, %cst {dimension_numbers = #tpu.dot_dimension_numbers<[1], [0], [0], [1], [0, 0, 1, 1], [], []>} : vector<512x128xbf16>, vector<128x128xbf16>, vector<512x128xf32> -> vector<512x128xf32>
    %7 = arith.addf %3, %6 : vector<512x128xf32>
    %c0_6 = arith.constant 0 : index
    %c0_7 = arith.constant 0 : index
    %8 = vector.load %arg7[%c0_6, %c0_7] : memref<512x128xf32, #tpu.memory_space<vmem>>, vector<512x128xf32>
    tpu.vector_store %arg7[%c0_6, %c0_7], %7 {strides = array<i32>} : memref<512x128xf32, #tpu.memory_space<vmem>>, vector<512x128xf32>,
    %c0_i32_8 = arith.constant 0 : i32
    %9 = arith.cmpi eq, %arg2, %c0_i32_8 : i32
    %10 = arith.extui %9 : i1 to i32
    %c0_i32_9 = arith.constant 0 : i32
    %11 = arith.cmpi ne, %10, %c0_i32_9 : i32
    scf.if %11 {
      %c0_10 = arith.constant 0 : index
      %c0_11 = arith.constant 0 : index
      %12 = vector.load %arg7[%c0_10, %c0_11] : memref<512x128xf32, #tpu.memory_space<vmem>>, vector<512x128xf32>
      %cst_12 = arith.constant 0.000000e+00 : f32
      %13 = vector.broadcast %cst_12 : f32 to vector<512x128xf32>
      %14 = arith.maximumf %12, %13 : vector<512x128xf32>
      %15 = arith.truncf %14 : vector<512x128xf32> to vector<512x128xbf16>
      %c0_13 = arith.constant 0 : index
      %c0_14 = arith.constant 0 : index
      %16 = vector.load %arg6[%c0_13, %c0_14] : memref<512x128xbf16, #tpu.memory_space<vmem>>, vector<512x128xbf16>
      tpu.vector_store %arg6[%c0_13, %c0_14], %15 {strides = array<i32>} : memref<512x128xbf16, #tpu.memory_space<vmem>>, vector<512x128xbf16>,
    } else {
    }
    return
  }
  func.func @transform_0(%arg0: i32, %arg1: i32, %arg2: i32) -> (i32, i32) {
    %c0_i32 = arith.constant 0 : i32
    return %arg0, %arg2 : i32, i32
  }
  func.func @transform_1(%arg0: i32, %arg1: i32, %arg2: i32) -> (i32, i32) {
    %c0_i32 = arith.constant 0 : i32
    return %arg2, %arg1 : i32, i32
  }
  func.func @transform_2(%arg0: i32, %arg1: i32, %arg2: i32) -> (i32, i32) {
    %c0_i32 = arith.constant 0 : i32
    %c0_i32_0 = arith.constant 0 : i32
    return %c0_i32, %arg1 : i32, i32
  }
  func.func @transform_3(%arg0: i32, %arg1: i32, %arg2: i32) -> (i32, i32) {
    %c0_i32 = arith.constant 0 : i32
    return %arg0, %arg1 : i32, i32
  }
}

</mosaic_0001>

<bundles_post_ra>
// kernel: tpu_custom_call.1
= control target key start
LH: loop header
LB: loop body
LE: loop exit
PB: predicated region body
PF: predicated region fallthrough
CT: control target
= control target key end

     0   :  { %8 = vsyncpa [#allocation4], 0  ;;  %s2955_s0 = inlined_call_operand.hbm [shape: bf16[18432,128], index: 0, kind: input, shape index: {}]   ;;  %s2956_s1 = inlined_call_operand.hbm [shape: bf16[128,128], index: 1, kind: input, shape index: {}]   ;;  %s2957_s2 = inlined_call_operand.hbm [shape: f32[1,128], index: 2, kind: input, shape index: {}]   ;;  %s2958_s3 = inlined_call_operand.hbm [shape: bf16[18432,128], index: 3, kind: output, shape index: {}]  }
   0x1   :  { %10 = vsyncpa [#allocation4 + $0x1], 0 }
   0x2   :  { %11 = vsyncpa [#allocation7], 0 }
   0x3   :  { %12 = vsyncpa [#allocation5], 0 }
   0x4   :  { %14 = vsyncpa [#allocation5 + $0x1], 0  ;;  %s2563_s12 = smov 0   ;;  %s2565_s13 = smov 0  }
   0x5   :  { %s2567_s14 = smov 0   ;;  %s2569_s15 = smov 0  }
   0x6   :  { %s2571_s16 = smov 0   ;;  %s2573_s17 = smov 0  }
   0x7 LB: > { %s1717_s18 = sadd.s32 4294967295, %s2533_s17   ;;  %s1718_s19 = sadd.s32 4294967294, %s2533_s17   ;;  %s2533_s17 = sphi %s2573_s17, %s20_s17   ;;  %s2529_s16 = sphi %s2571_s16, %s2980_s16   ;;  %s2525_s15 = sphi %s2569_s15, %s2979_s15   ;;  %s2521_s14 = sphi %s2567_s14, %s2978_s14   ;;  %s2517_s13 = sphi %s2565_s13, %s2977_s13   ;;  %s2513_s12 = sphi %s2563_s12, %s2976_s12  }
   0x8   : > { %p61_p0 = scmp.ne.s32.totalorder %s2517_s13, %s2513_s12  ;;  %p2597_p1 = scmp.eq.s32.totalorder %s1717_s18, 0 }
   0x9   : > { %p2601_p2 = scmp.eq.s32.totalorder %s1717_s18, 35  ;;  %p147_p3 = scmp.eq.s32.totalorder %s1718_s19, 35 }
   0xa   : > { %s2963_s20 = scalar_select %p2597_p1, 1, 0 }
   0xb   : > { %s2964_s21 = scalar_select %p2601_p2, 1, 0 }
   0xc   : > { %p2607_p4 = por %p2597_p1, %p61_p0  ;;  %p1719_p5 = scmp.ge.s32.totalorder %s2533_s17, 1 }
   0xd   : > { %p2612_p6 = por %p147_p3, %p61_p0  ;;  %p154_p7 = scmp.lt.s32.totalorder %s2533_s17, 37 }
   0xe   : > { %s2965_s22 = scalar_select %p2607_p4, 1, 0 }
   0xf   : > { %s2966_s23 = scalar_select %p2612_p6, 1, 0 }
  0x10   : > { %p2617_p8 = pnand %p1719_p5, %p154_p7  ;;  %s2535_s25 = smov [#allocation6]  }
  0x11   : > { %s170_s26 = sshll.u32 %s2535_s25, 4  ;;  %s2536_s28 = smov [#allocation8]   ;;  %s171_s26 = int_to_ptr.vmem [resolvable:$true] %s170_s26 }
  0x12   : > { %s2967_s24 = scalar_select %p2617_p8, 1, 0 }
  0x13   : > { %p2246_p9 = pneg %p2617_p8  ;;  %s186_s29 = sshll.u32 %s2536_s28, 4  ;;  %s2629_s29 = int_to_ptr.vmem [resolvable:$true] %s186_s29 }
  0x14   : > { %s2361_s5 = scalar_lea.hbm %s2956_s1, 1024 }
  0x15   : > { %p2625_p10 = pnand %p2246_p9, %p2597_p1  ;;  %p2362_p11 = scmp.ne.s32.totalorder %s2956_s1, %s2361_s5 }
  0x16   : > { %p2368_p3 = scmp.lt.u32.totalorder %s2361_s5, %s2956_s1 }
  0x17   : > { %p2363_p12 = pneg %p2625_p10 }
  0x19   : > { %p2364_p13 = pnand %p2363_p12, %p2362_p11 }
  0x1b   : > { %p2365_p0 = pneg %p2364_p13 }
  0x1d   : > { %p2370_p5 = pnand %p2368_p3, %p2365_p0 }
  0x1f   : > { %2373 = shalt.err (!%p2370_p5)
}
  0x20   : > { %s2374_s10 = scalar_lea.vmem %s171_s26, 1024  ;;  %p2382_p1 = scmp.lt.s32.totalorder %s171_s26, %s171_s26 }
  0x21   : > { %p2375_p7 = scmp.ne.s32.totalorder %s171_s26, %s2374_s10  ;;  %p2383_p4 = scmp.lt.s32.totalorder %s2374_s10, %s2374_s10 }
  0x23   : > { %p2377_p9 = pnand %p2375_p7, %p2363_p12  ;;  %p2384_p8 = por %p2383_p4, %p2382_p1 }
  0x25   : > { %p2378_p6 = pneg %p2377_p9 }
  0x27   : > { %p2385_p2 = pnand %p2384_p8, %p2378_p6 }
  0x29   : > { %2388 = shalt.err (!%p2385_p2)
}
  0x2a   : > { %s2537_s11 = smov 64   ;;  %s2538_s18 = smov 4  }
  0x2b   : > { %2249 = dma.hbm_to_vmem [thread:$0]  (!%p2625_p10), %s2956_s1, 1024, %s171_s26, [#allocation7], %s2537_s11, %s2537_s11, %s2538_s18  }
  0x2c   : > { %s2389_s4 = scalar_lea.hbm %s2957_s2, 16 }
  0x2d   : > { %p2390_p1 = scmp.ne.s32.totalorder %s2957_s2, %s2389_s4  ;;  %p2396_p6 = scmp.lt.u32.totalorder %s2389_s4, %s2957_s2 }
  0x2f   : > { %p2392_p2 = pnand %p2390_p1, %p2363_p12 }
  0x31   : > { %p2393_p4 = pneg %p2392_p2 }
  0x33   : > { %p2398_p8 = pnand %p2396_p6, %p2393_p4 }
  0x35   : > { %2401 = shalt.err (!%p2398_p8)
}
  0x36   : > { %s2402_s26 = scalar_lea.vmem %s2629_s29, 16  ;;  %s2409_s9 = scalar_lea.vmem %s2629_s29, 32 }
  0x37   : > { %p2403_p11 = scmp.ne.s32.totalorder %s2629_s29, %s2402_s26  ;;  %p2410_p3 = scmp.lt.s32.totalorder %s2629_s29, %s2629_s29 }
  0x38   : > { %p2411_p5 = scmp.lt.s32.totalorder %s2409_s9, %s2402_s26 }
  0x39   : > { %p2405_p13 = pnand %p2403_p11, %p2363_p12 }
  0x3a   : > { %p2412_p7 = por %p2411_p5, %p2410_p3 }
  0x3b   : > { %p2406_p0 = pneg %p2405_p13 }
  0x3d   : > { %p2413_p9 = pnand %p2412_p7, %p2406_p0 }
  0x3f   : > { %2416 = shalt.err (!%p2413_p9)
}
  0x40   : > { %2252 = dma.hbm_to_vmem [thread:$0]  (!%p2625_p10), %s2957_s2, 16, %s2629_s29, [#allocation7]  }
  0x41   : > { %s39_s25 = sadd.s32 1, %s2529_s16  ;;  %s48_s28 = sadd.s32 1, %s2521_s14 }
  0x42   : > { %p41_p12 = scmp.ge.s32.totalorder %s39_s25, 36  ;;  %p55_p1 = scmp.ne.s32.totalorder %s2521_s14, %s2517_s13 }
  0x43   : > { %p56_p2 = scmp.eq.s32.totalorder %s2533_s17, 0  ;;  %p2263_p4 = scmp.lt.s32.totalorder %s2533_s17, 36 }
  0x44   : > { %s2982_s25 = smov (%p41_p12, %s39_s25), 0  ;;  %p2969_p8 = scmp.ne.s32.totalorder %s2964_s21, 0 }
  0x45   : > { %p57_p6 = por %p56_p2, %p55_p1  ;;  %s43_s30 = ssub.s32 %s2529_s16, %s2982_s25 }
  0x46   : > { %p2692_p11 = por %p2969_p8, %p55_p1  ;;  %s197_s4 = sand.u32 1, %s2521_s14  }
  0x47   : > { %p46_p13 = scmp.eq.s32.totalorder %s43_s30, 0  ;;  %s1723_s29 = sshll.u32 %s197_s4, 8 }
  0x48   : > { %s1841_s5 = sshll.u32 %s2529_s16, 12  ;;  %s201_s21 = scalar_lea.vmem [#allocation3], %s1723_s29 }
  0x49   : > { %s2701_s6 = scalar_select %p46_p13, %s2521_s14, %s48_s28  }
  0x4a   : > { %s2706_s26 = scalar_lea.hbm %s2955_s0, %s1841_s5  ;;  %s209_s9 = sshll.u32 %s201_s21, 4  ;;  %s2714_s9 = int_to_ptr.vmem [resolvable:$true] %s209_s9 }
  0x4b   : > { %p2710_p10 = pnand %p2263_p4, %p57_p6  ;;  %s2716_s19 = scalar_lea.sflag [#allocation4], %s197_s4 }
  0x4c   : > { %s2417_s28 = scalar_lea.hbm %s2706_s26, 4096  ;;  %s2422_s5 = scalar_lea.hbm %s2955_s0, 147456 }
  0x4d   : > { %p2418_p0 = scmp.ne.s32.totalorder %s2706_s26, %s2417_s28  ;;  %p2419_p3 = pneg %p2710_p10 }
  0x4e   : > { %p2423_p9 = scmp.lt.u32.totalorder %s2706_s26, %s2955_s0  ;;  %p2424_p12 = scmp.lt.u32.totalorder %s2422_s5, %s2417_s28 }
  0x4f   : > { %p2420_p5 = pnand %p2419_p3, %p2418_p0  ;;  %p2426_p2 = scmp.lt.u32.totalorder %s2417_s28, %s2706_s26 }
  0x50   : > { %p2425_p1 = por %p2424_p12, %p2423_p9 }
  0x51   : > { %p2421_p7 = pneg %p2420_p5 }
  0x52   : > { %p2427_p4 = por %p2426_p2, %p2425_p1 }
  0x54   : > { %p2428_p6 = pnand %p2427_p4, %p2421_p7 }
  0x56   : > { %2431 = shalt.err (!%p2428_p6)
}
  0x57   : > { %s2432_s4 = scalar_lea.vmem %s2714_s9, 4096  ;;  %s2539_s21 = smov [#allocation3]  }
  0x58   : > { %p2433_p8 = scmp.ne.s32.totalorder %s2714_s9, %s2432_s4  ;;  %s2437_s30 = sshll.u32 %s2539_s21, 4  ;;  %s2438_s30 = int_to_ptr.vmem [resolvable:$false] %s2437_s30 }
  0x59   : > { %s2439_s29 = scalar_lea.vmem %s2438_s30, 8192  ;;  %p2440_p5 = scmp.lt.s32.totalorder %s2714_s9, %s2438_s30 }
  0x5a   : > { %p2435_p13 = pnand %p2433_p8, %p2419_p3  ;;  %p2441_p9 = scmp.lt.s32.totalorder %s2439_s29, %s2432_s4 }
  0x5c   : > { %p2436_p0 = pneg %p2435_p13  ;;  %p2442_p12 = por %p2441_p9, %p2440_p5 }
  0x5e   : > { %p2443_p1 = pnand %p2442_p12, %p2436_p0 }
  0x60   : > { %2446 = shalt.err (!%p2443_p1)
}
  0x61   : > { %2256 = dma.hbm_to_vmem [thread:$0]  (!%p2710_p10), %s2706_s26, 4096, %s2714_s9, %s2716_s19, %s2537_s11, %s2537_s11, %s2538_s18  }
  0x62   : > { %p2972_p3 = scmp.ne.s32.totalorder %s2967_s24, 0 }
  0x63   : > { %s2750_s28 = sand.u32 (!%p2972_p3), 1, %s2517_s13   ;;  %p2973_p7 = scmp.ne.s32.totalorder (!%p2972_p3), %s2965_s22, 0 }
  0x64   : > { %221 = sbr.rel (%p2972_p3) target bundleno = 436 (0x1b4), region = 32  ;;  %s1727_s5 = sshll.u32 (!%p2972_p3), %s2750_s28, 8 }
  0x65   : > { %s224_s7 = scalar_lea.sflag (!%p2972_p3), [#allocation4], %s2750_s28  ;;  %s2756_s10 = scalar_lea.vmem (!%p2972_p3), [#allocation3], %s1727_s5 }
  0x6b   : > { %2500 = dma.done.wait (%p2973_p7), %s224_s7, 4096  }
  0x6c   : > { %2502 = vsyncadd (%p2973_p7), %s224_s7, 4294963200  ;;  %p2974_p10 = scmp.ne.s32.totalorder %s2963_s20, 0 }
  0x6e   : > { %2504 = dma.done.wait (%p2974_p10), [#allocation7], 1040  }
  0x6f   : > { %2506 = vsyncadd (%p2974_p10), [#allocation7], 4294966256  ;;  %v2321_v0 = vld [vmem:[#allocation6] sm:$0xff]   ;;  %v2322_v1 = vld [vmem:[#allocation6 + $0x8] sm:$0xff]   ;;  %s2810_s20 = scalar_lea.vmem [#allocation9], %s1727_s5  ;;  %s1906_s22 = sshll.u32 %s2525_s15, 12 }
  0x70   : > { %2138 = vmatprep.subr.bf16.mxu0 %v2321_v0  ;;  %2218 = vmatprep.subr.bf16.mxu1 %v2321_v0  ;;  %v2323_v2 = vld [vmem:[#allocation6 + $0x10] sm:$0xff]   ;;  %v2324_v3 = vld [vmem:[#allocation6 + $0x18] sm:$0xff]   ;;  %v2329_v4 = vld [vmem:[%s2756_s10] sm:$0xff]   ;;  %s1604_s24 = sshll.u32 %s2810_s20, 4  ;;  %s2901_s15 = scalar_lea.hbm %s2958_s3, %s1906_s22  ;;  %s2903_s24 = int_to_ptr.vmem [resolvable:$true] %s1604_s24 }
  0x71   : > { %2139 = vmatpush3.bf16.msra.mxu0 %v2321_v0  ;;  %2226 = vmatpush3.bf16.msra.mxu1 %v2321_v0  ;;  %v2330_v5 = vld [vmem:[%s2756_s10 + $0x80] sm:$0xff]   ;;  %v2326_v7 = vld [vmem:[#allocation6 + $0x28] sm:$0xff]   ;;  %v2327_v8 = vld [vmem:[#allocation6 + $0x30] sm:$0xff]   ;;  %s1590_s26 = scalar_lea.sflag [#allocation5], %s2750_s28  ;;  %s2447_s9 = scalar_lea.vmem %s2903_s24, 4096 }
  0x72   : > { %2140 = vmatprep.subr.bf16.mxu0 %v2322_v1  ;;  %2219 = vmatprep.subr.bf16.mxu1 %v2322_v1  ;;  %v2325_v6 = vld [vmem:[#allocation6 + $0x20] sm:$0xff]   ;;  %v2328_v9 = vld [vmem:[#allocation6 + $0x38] sm:$0xff]   ;;  %v2331_v10 = vld [vmem:[%s2756_s10 + $0x8] sm:$0xff]   ;;  %p2448_p2 = scmp.ne.s32.totalorder %s2903_s24, %s2447_s9  ;;  %s2540_s19 = smov [#allocation9]  }
  0x73   : > { %2154 = vmatprep.mubr.bf16.mxu0 %v2329_v4  ;;  %2186 = vmatprep.mubr.bf16.mxu1 %v2330_v5  ;;  %v2332_v11 = vld [vmem:[%s2756_s10 + $0x88] sm:$0xff]   ;;  %v2333_v12 = vld [vmem:[%s2756_s10 + $0x10] sm:$0xff]   ;;  %v2335_v14 = vld [vmem:[%s2756_s10 + $0x18] sm:$0xff]   ;;  %s2451_s8 = sshll.u32 %s2540_s19, 4  ;;  %s2452_s8 = int_to_ptr.vmem [resolvable:$false] %s2451_s8 }
  0x74   : > { %v2334_v13 = vld [vmem:[%s2756_s10 + $0x90] sm:$0xff]   ;;  %v2336_v15 = vld [vmem:[%s2756_s10 + $0x98] sm:$0xff]   ;;  %v2337_v16 = vld [vmem:[%s2756_s10 + $0x20] sm:$0xff]   ;;  %p2449_p4 = pnand %p2448_p2, %p2692_p11  ;;  %s2453_s4 = scalar_lea.vmem %s2452_s8, 8192 }
  0x75   : > { %2141 = vmatpush3.bf16.msra.mxu0 %v2322_v1  ;;  %2227 = vmatpush3.bf16.msra.mxu1 %v2322_v1  ;;  %v2338_v17 = vld [vmem:[%s2756_s10 + $0xa0] sm:$0xff]   ;;  %v2339_v18 = vld [vmem:[%s2756_s10 + $0x28] sm:$0xff]   ;;  %v2341_v20 = vld [vmem:[%s2756_s10 + $0x30] sm:$0xff]   ;;  %p2454_p8 = scmp.lt.s32.totalorder %s2903_s24, %s2452_s8  ;;  %p2455_p13 = scmp.lt.s32.totalorder %s2453_s4, %s2447_s9 }
  0x76   : > { %2142 = vmatprep.subr.bf16.mxu0 %v2323_v2  ;;  %2220 = vmatprep.subr.bf16.mxu1 %v2323_v2  ;;  %v2340_v19 = vld [vmem:[%s2756_s10 + $0xa8] sm:$0xff]   ;;  %v2342_v21 = vld [vmem:[%s2756_s10 + $0xb0] sm:$0xff]   ;;  %v2343_v22 = vld [vmem:[%s2756_s10 + $0x38] sm:$0xff]   ;;  %p2450_p6 = pneg %p2449_p4 }
  0x77   : > { %v2344_v23 = vld [vmem:[%s2756_s10 + $0xb8] sm:$0xff]   ;;  %v2345_v24 = vld [vmem:[%s2756_s10 + $0x40] sm:$0xff]   ;;  %v2347_v26 = vld [vmem:[%s2756_s10 + $0x48] sm:$0xff]   ;;  %p2456_p0 = por %p2455_p13, %p2454_p8 }
  0x78   : > { %v2346_v25 = vld [vmem:[%s2756_s10 + $0xc0] sm:$0xff]   ;;  %v2348_v27 = vld [vmem:[%s2756_s10 + $0xc8] sm:$0xff]   ;;  %v2349_v28 = vld [vmem:[%s2756_s10 + $0x50] sm:$0xff]  }
  0x79   : > { %2143 = vmatpush3.bf16.msra.mxu0 %v2323_v2  ;;  %2228 = vmatpush3.bf16.msra.mxu1 %v2323_v2  ;;  %v2350_v29 = vld [vmem:[%s2756_s10 + $0xd0] sm:$0xff]   ;;  %v2351_v30 = vld [vmem:[%s2756_s10 + $0x58] sm:$0xff]   ;;  %v2353_v32 = vld [vmem:[%s2756_s10 + $0x60] sm:$0xff]   ;;  %p2457_p5 = pnand %p2456_p0, %p2450_p6 }
  0x7a   : > { %2144 = vmatprep.subr.bf16.mxu0 %v2324_v3  ;;  %2221 = vmatprep.subr.bf16.mxu1 %v2324_v3  ;;  %v2352_v31 = vld [vmem:[%s2756_s10 + $0xd8] sm:$0xff]   ;;  %v2354_v33 = vld [vmem:[%s2756_s10 + $0xe0] sm:$0xff]   ;;  %v2355_v34 = vld [vmem:[%s2756_s10 + $0x68] sm:$0xff]  }
  0x7b   : > { %v2356_v35 = vld [vmem:[%s2756_s10 + $0xe8] sm:$0xff]   ;;  %v2357_v36 = vld [vmem:[%s2756_s10 + $0x70] sm:$0xff]   ;;  %v2359_v38 = vld [vmem:[%s2756_s10 + $0x78] sm:$0xff]  }
  0x7c   : > { %v2358_v37 = vld [vmem:[%s2756_s10 + $0xf0] sm:$0xff]   ;;  %v2360_v39 = vld [vmem:[%s2756_s10 + $0xf8] sm:$0xff]   ;;  %v2798_v40 = vld [vmem:[#allocation8] ss:$0 sm:$0xff] }
  0x7d   : > { %2145 = vmatpush3.bf16.msra.mxu0 %v2324_v3  ;;  %2229 = vmatpush3.bf16.msra.mxu1 %v2324_v3 }
  0x7e   : > { %2146 = vmatprep.subr.bf16.mxu0 %v2325_v6  ;;  %2222 = vmatprep.subr.bf16.mxu1 %v2325_v6 }
  0x81   : > { %2147 = vmatpush3.bf16.msra.mxu0 %v2325_v6  ;;  %2230 = vmatpush3.bf16.msra.mxu1 %v2325_v6 }
  0x82   : > { %2148 = vmatprep.subr.bf16.mxu0 %v2326_v7  ;;  %2223 = vmatprep.subr.bf16.mxu1 %v2326_v7 }
  0x85   : > { %2149 = vmatpush3.bf16.msra.mxu0 %v2326_v7  ;;  %2231 = vmatpush3.bf16.msra.mxu1 %v2326_v7 }
  0x86   : > { %2150 = vmatprep.subr.bf16.mxu0 %v2327_v8  ;;  %2224 = vmatprep.subr.bf16.mxu1 %v2327_v8 }
  0x89   : > { %2151 = vmatpush3.bf16.msra.mxu0 %v2327_v8  ;;  %2232 = vmatpush3.bf16.msra.mxu1 %v2327_v8 }
  0x8a   : > { %2152 = vmatprep.subr.bf16.mxu0 %v2328_v9  ;;  %2225 = vmatprep.subr.bf16.mxu1 %v2328_v9 }
  0x8d   : > { %2153 = vmatpush3.bf16.msra.mxu0 %v2328_v9  ;;  %2233 = vmatpush3.bf16.msra.mxu1 %v2328_v9 }
  0x90   : > { %2155 = vmatmul.mubr.bf16.vlgmr.msra.gmra.mrb[0].mxu0 %v2331_v10  ;;  %2187 = vmatmul.mubr.bf16.vlgmr.msra.gmra.mrb[0].mxu1 %v2332_v11 }
  0x91   : > { %2158 = vmatprep.mubr.bf16.mxu0 %v2333_v12  ;;  %2190 = vmatprep.mubr.bf16.mxu1 %v2334_v13 }
  0x98   : > { %2159 = vmatmul.mubr.bf16.gmra.mrb[4].mxu0 %v2335_v14  ;;  %2191 = vmatmul.mubr.bf16.gmra.mrb[4].mxu1 %v2336_v15 }
  0x99   : > { %2162 = vmatprep.mubr.bf16.mxu0 %v2337_v16  ;;  %2194 = vmatprep.mubr.bf16.mxu1 %v2338_v17 }
  0xa0   : > { %2163 = vmatmul.mubr.bf16.gmra.mrb[8].mxu0 %v2339_v18  ;;  %2195 = vmatmul.mubr.bf16.gmra.mrb[8].mxu1 %v2340_v19 }
  0xa1   : > { %2166 = vmatprep.mubr.bf16.mxu0 %v2341_v20  ;;  %2198 = vmatprep.mubr.bf16.mxu1 %v2342_v21 }
  0xa8   : > { %2167 = vmatmul.mubr.bf16.gmra.mrb[12].mxu0 %v2343_v22  ;;  %2199 = vmatmul.mubr.bf16.gmra.mrb[12].mxu1 %v2344_v23 }
  0xa9   : > { %2170 = vmatprep.mubr.bf16.mxu0 %v2345_v24  ;;  %2202 = vmatprep.mubr.bf16.mxu1 %v2346_v25 }
  0xb0   : > { %2171 = vmatmul.mubr.bf16.gmra.mrb[16].mxu0 %v2347_v26  ;;  %2203 = vmatmul.mubr.bf16.gmra.mrb[16].mxu1 %v2348_v27 }
  0xb1   : > { %2174 = vmatprep.mubr.bf16.mxu0 %v2349_v28  ;;  %2206 = vmatprep.mubr.bf16.mxu1 %v2350_v29 }
  0xb8   : > { %2175 = vmatmul.mubr.bf16.gmra.mrb[20].mxu0 %v2351_v30  ;;  %2207 = vmatmul.mubr.bf16.gmra.mrb[20].mxu1 %v2352_v31 }
  0xb9   : > { %2178 = vmatprep.mubr.bf16.mxu0 %v2353_v32  ;;  %2210 = vmatprep.mubr.bf16.mxu1 %v2354_v33 }
  0xc0   : > { %2179 = vmatmul.mubr.bf16.gmra.mrb[24].mxu0 %v2355_v34  ;;  %2211 = vmatmul.mubr.bf16.gmra.mrb[24].mxu1 %v2356_v35 }
  0xc1   : > { %2182 = vmatprep.mubr.bf16.mxu0 %v2357_v36  ;;  %2214 = vmatprep.mubr.bf16.mxu1 %v2358_v37 }
  0xc8   : > { %2183 = vmatmul.mubr.bf16.gmra.mrb[28].mxu0 %v2359_v38  ;;  %2215 = vmatmul.mubr.bf16.gmra.mrb[28].mxu1 %v2360_v39 }
 0x163   : > { %v2156_v41 = vpop.f32.mrb[0].mxu0  ;;  %v2188_v42 = vpop.f32.mrb[0].mxu1 }
 0x164   : > { %v1012_v43 = vadd.f32 %v2156_v41, %v2798_v40  ;;  %v1044_v44 = vadd.f32 %v2188_v42, %v2798_v40  ;;  %v755_v45 = vpop.f32.mrb[1].mxu0  ;;  %v883_v46 = vpop.f32.mrb[1].mxu1 }
 0x165   : > { %v1010_v47 = vadd.f32 %v2798_v40, %v755_v45  ;;  %v1042_v48 = vadd.f32 %v2798_v40, %v883_v46  ;;  %v2157_v49 = vpop.f32.mrb[2].mxu0  ;;  %v2189_v50 = vpop.f32.mrb[2].mxu1 }
 0x166   : > { %v1013_v51 = vadd.f32 %v2157_v49, %v2798_v40  ;;  %v1045_v52 = vadd.f32 %v2189_v50, %v2798_v40  ;;  %v758_v53 = vpop.f32.mrb[3].mxu0  ;;  %v886_v54 = vpop.f32.mrb[3].mxu1  ;;  %v1207_v57 = vmax.f32 %v1012_v43, 0.0  ;;  %v1239_v58 = vmax.f32 %v1044_v44, 0.0 }
 0x167   : > { %v1011_v55 = vadd.f32 %v2798_v40, %v758_v53  ;;  %v1043_v56 = vadd.f32 %v2798_v40, %v886_v54  ;;  %v1205_v61 = vmax.f32 %v1010_v47, 0.0  ;;  %v1237_v62 = vmax.f32 %v1042_v48, 0.0 }
 0x168   : > { %v1208_v59 = vmax.f32 %v1013_v51, 0.0  ;;  %v1240_v60 = vmax.f32 %v1045_v52, 0.0 }
 0x169   : > { %v1206_v63 = vmax.f32 %v1011_v55, 0.0  ;;  %v1238_v0 = vmax.f32 %v1043_v56, 0.0 }
 0x16a   : > { %v1915_v1 = vpack.c.bf16 %v1208_v59, %v1207_v57  ;;  %v1995_v2 = vpack.c.bf16 %v1240_v60, %v1239_v58 }
 0x16b   : > { %v1910_v3 = vpack.c.bf16 %v1206_v63, %v1205_v61  ;;  %v1990_v4 = vpack.c.bf16 %v1238_v0, %v1237_v62  ;;  %v2160_v5 = vpop.f32.mrb[4].mxu0  ;;  %v2192_v6 = vpop.f32.mrb[4].mxu1 }
 0x16c   : > { %2067 = vst [vmem:[%s2810_s20 + $0x8] sm:$0xff] %v1915_v1   ;;  %2083 = vst [vmem:[%s2810_s20 + $0x88] sm:$0xff] %v1995_v2   ;;  %v1016_v7 = vadd.f32 %v2160_v5, %v2798_v40  ;;  %v1048_v8 = vadd.f32 %v2192_v6, %v2798_v40  ;;  %v771_v9 = vpop.f32.mrb[5].mxu0  ;;  %v899_v10 = vpop.f32.mrb[5].mxu1 }
 0x16d   : > { %1911 = vst [vmem:[%s2810_s20] sm:$0xff] %v1910_v3   ;;  %2082 = vst [vmem:[%s2810_s20 + $0x80] sm:$0xff] %v1990_v4   ;;  %v1014_v11 = vadd.f32 %v2798_v40, %v771_v9  ;;  %v1046_v12 = vadd.f32 %v2798_v40, %v899_v10  ;;  %v2161_v13 = vpop.f32.mrb[6].mxu0  ;;  %v2193_v14 = vpop.f32.mrb[6].mxu1 }
 0x16e   : > { %v1017_v15 = vadd.f32 %v2161_v13, %v2798_v40  ;;  %v1049_v16 = vadd.f32 %v2193_v14, %v2798_v40  ;;  %v774_v17 = vpop.f32.mrb[7].mxu0  ;;  %v902_v18 = vpop.f32.mrb[7].mxu1  ;;  %v1211_v21 = vmax.f32 %v1016_v7, 0.0  ;;  %v1243_v22 = vmax.f32 %v1048_v8, 0.0 }
 0x16f   : > { %v1015_v19 = vadd.f32 %v2798_v40, %v774_v17  ;;  %v1047_v20 = vadd.f32 %v2798_v40, %v902_v18  ;;  %v1209_v25 = vmax.f32 %v1014_v11, 0.0  ;;  %v1241_v26 = vmax.f32 %v1046_v12, 0.0 }
 0x170   : > { %v1212_v23 = vmax.f32 %v1017_v15, 0.0  ;;  %v1244_v24 = vmax.f32 %v1049_v16, 0.0 }
 0x171   : > { %v1210_v27 = vmax.f32 %v1015_v19, 0.0  ;;  %v1242_v28 = vmax.f32 %v1047_v20, 0.0 }
 0x172   : > { %v1925_v29 = vpack.c.bf16 %v1212_v23, %v1211_v21  ;;  %v2005_v30 = vpack.c.bf16 %v1244_v24, %v1243_v22 }
 0x173   : > { %v1920_v31 = vpack.c.bf16 %v1210_v27, %v1209_v25  ;;  %v2000_v32 = vpack.c.bf16 %v1242_v28, %v1241_v26  ;;  %v2164_v33 = vpop.f32.mrb[8].mxu0  ;;  %v2196_v34 = vpop.f32.mrb[8].mxu1 }
 0x174   : > { %2069 = vst [vmem:[%s2810_s20 + $0x18] sm:$0xff] %v1925_v29   ;;  %2085 = vst [vmem:[%s2810_s20 + $0x98] sm:$0xff] %v2005_v30   ;;  %v1020_v35 = vadd.f32 %v2164_v33, %v2798_v40  ;;  %v1052_v36 = vadd.f32 %v2196_v34, %v2798_v40  ;;  %v787_v37 = vpop.f32.mrb[9].mxu0  ;;  %v915_v38 = vpop.f32.mrb[9].mxu1 }
 0x175   : > { %2068 = vst [vmem:[%s2810_s20 + $0x10] sm:$0xff] %v1920_v31   ;;  %2084 = vst [vmem:[%s2810_s20 + $0x90] sm:$0xff] %v2000_v32   ;;  %v1018_v39 = vadd.f32 %v2798_v40, %v787_v37  ;;  %v1050_v41 = vadd.f32 %v2798_v40, %v915_v38  ;;  %v2165_v42 = vpop.f32.mrb[10].mxu0  ;;  %v2197_v43 = vpop.f32.mrb[10].mxu1 }
 0x176   : > { %v1021_v44 = vadd.f32 %v2165_v42, %v2798_v40  ;;  %v1053_v45 = vadd.f32 %v2197_v43, %v2798_v40  ;;  %v790_v46 = vpop.f32.mrb[11].mxu0  ;;  %v918_v47 = vpop.f32.mrb[11].mxu1  ;;  %v1215_v50 = vmax.f32 %v1020_v35, 0.0  ;;  %v1247_v51 = vmax.f32 %v1052_v36, 0.0 }
 0x177   : > { %v1019_v48 = vadd.f32 %v2798_v40, %v790_v46  ;;  %v1051_v49 = vadd.f32 %v2798_v40, %v918_v47  ;;  %v1213_v54 = vmax.f32 %v1018_v39, 0.0  ;;  %v1245_v55 = vmax.f32 %v1050_v41, 0.0 }
 0x178   : > { %v1216_v52 = vmax.f32 %v1021_v44, 0.0  ;;  %v1248_v53 = vmax.f32 %v1053_v45, 0.0 }
 0x179   : > { %v1214_v56 = vmax.f32 %v1019_v48, 0.0  ;;  %v1246_v57 = vmax.f32 %v1051_v49, 0.0 }
 0x17a   : > { %v1935_v58 = vpack.c.bf16 %v1216_v52, %v1215_v50  ;;  %v2015_v59 = vpack.c.bf16 %v1248_v53, %v1247_v51 }
 0x17b   : > { %v1930_v60 = vpack.c.bf16 %v1214_v56, %v1213_v54  ;;  %v2010_v61 = vpack.c.bf16 %v1246_v57, %v1245_v55  ;;  %v2168_v62 = vpop.f32.mrb[12].mxu0  ;;  %v2200_v63 = vpop.f32.mrb[12].mxu1 }
 0x17c   : > { %2071 = vst [vmem:[%s2810_s20 + $0x28] sm:$0xff] %v1935_v58   ;;  %2087 = vst [vmem:[%s2810_s20 + $0xa8] sm:$0xff] %v2015_v59   ;;  %v1024_v0 = vadd.f32 %v2168_v62, %v2798_v40  ;;  %v1056_v1 = vadd.f32 %v2200_v63, %v2798_v40  ;;  %v803_v2 = vpop.f32.mrb[13].mxu0  ;;  %v931_v3 = vpop.f32.mrb[13].mxu1 }
 0x17d   : > { %2070 = vst [vmem:[%s2810_s20 + $0x20] sm:$0xff] %v1930_v60   ;;  %2086 = vst [vmem:[%s2810_s20 + $0xa0] sm:$0xff] %v2010_v61   ;;  %v1022_v4 = vadd.f32 %v2798_v40, %v803_v2  ;;  %v1054_v5 = vadd.f32 %v2798_v40, %v931_v3  ;;  %v2169_v6 = vpop.f32.mrb[14].mxu0  ;;  %v2201_v7 = vpop.f32.mrb[14].mxu1 }
 0x17e   : > { %v1025_v8 = vadd.f32 %v2169_v6, %v2798_v40  ;;  %v1057_v9 = vadd.f32 %v2201_v7, %v2798_v40  ;;  %v806_v10 = vpop.f32.mrb[15].mxu0  ;;  %v934_v11 = vpop.f32.mrb[15].mxu1  ;;  %v1219_v14 = vmax.f32 %v1024_v0, 0.0  ;;  %v1251_v15 = vmax.f32 %v1056_v1, 0.0 }
 0x17f   : > { %v1023_v12 = vadd.f32 %v2798_v40, %v806_v10  ;;  %v1055_v13 = vadd.f32 %v2798_v40, %v934_v11  ;;  %v1217_v18 = vmax.f32 %v1022_v4, 0.0  ;;  %v1249_v19 = vmax.f32 %v1054_v5, 0.0 }
 0x180   : > { %v1220_v16 = vmax.f32 %v1025_v8, 0.0  ;;  %v1252_v17 = vmax.f32 %v1057_v9, 0.0 }
 0x181   : > { %v1218_v20 = vmax.f32 %v1023_v12, 0.0  ;;  %v1250_v21 = vmax.f32 %v1055_v13, 0.0 }
 0x182   : > { %v1945_v22 = vpack.c.bf16 %v1220_v16, %v1219_v14  ;;  %v2025_v23 = vpack.c.bf16 %v1252_v17, %v1251_v15 }
 0x183   : > { %v1940_v24 = vpack.c.bf16 %v1218_v20, %v1217_v18  ;;  %v2020_v25 = vpack.c.bf16 %v1250_v21, %v1249_v19  ;;  %v2172_v26 = vpop.f32.mrb[16].mxu0  ;;  %v2204_v27 = vpop.f32.mrb[16].mxu1 }
 0x184   : > { %2073 = vst [vmem:[%s2810_s20 + $0x38] sm:$0xff] %v1945_v22   ;;  %2089 = vst [vmem:[%s2810_s20 + $0xb8] sm:$0xff] %v2025_v23   ;;  %v1028_v28 = vadd.f32 %v2172_v26, %v2798_v40  ;;  %v1060_v29 = vadd.f32 %v2204_v27, %v2798_v40  ;;  %v819_v30 = vpop.f32.mrb[17].mxu0  ;;  %v947_v31 = vpop.f32.mrb[17].mxu1 }
 0x185   : > { %2072 = vst [vmem:[%s2810_s20 + $0x30] sm:$0xff] %v1940_v24   ;;  %2088 = vst [vmem:[%s2810_s20 + $0xb0] sm:$0xff] %v2020_v25   ;;  %v1026_v32 = vadd.f32 %v2798_v40, %v819_v30  ;;  %v1058_v33 = vadd.f32 %v2798_v40, %v947_v31  ;;  %v2173_v34 = vpop.f32.mrb[18].mxu0  ;;  %v2205_v35 = vpop.f32.mrb[18].mxu1 }
 0x186   : > { %v1029_v36 = vadd.f32 %v2173_v34, %v2798_v40  ;;  %v1061_v37 = vadd.f32 %v2205_v35, %v2798_v40  ;;  %v822_v38 = vpop.f32.mrb[19].mxu0  ;;  %v950_v39 = vpop.f32.mrb[19].mxu1  ;;  %v1223_v43 = vmax.f32 %v1028_v28, 0.0  ;;  %v1255_v44 = vmax.f32 %v1060_v29, 0.0 }
 0x187   : > { %v1027_v41 = vadd.f32 %v2798_v40, %v822_v38  ;;  %v1059_v42 = vadd.f32 %v2798_v40, %v950_v39  ;;  %v1221_v47 = vmax.f32 %v1026_v32, 0.0  ;;  %v1253_v48 = vmax.f32 %v1058_v33, 0.0 }
 0x188   : > { %v1224_v45 = vmax.f32 %v1029_v36, 0.0  ;;  %v1256_v46 = vmax.f32 %v1061_v37, 0.0 }
 0x189   : > { %v1222_v49 = vmax.f32 %v1027_v41, 0.0  ;;  %v1254_v50 = vmax.f32 %v1059_v42, 0.0 }
 0x18a   : > { %v1955_v51 = vpack.c.bf16 %v1224_v45, %v1223_v43  ;;  %v2035_v52 = vpack.c.bf16 %v1256_v46, %v1255_v44 }
 0x18b   : > { %v1950_v53 = vpack.c.bf16 %v1222_v49, %v1221_v47  ;;  %v2030_v54 = vpack.c.bf16 %v1254_v50, %v1253_v48  ;;  %v2176_v55 = vpop.f32.mrb[20].mxu0  ;;  %v2208_v56 = vpop.f32.mrb[20].mxu1 }
 0x18c   : > { %2075 = vst [vmem:[%s2810_s20 + $0x48] sm:$0xff] %v1955_v51   ;;  %2091 = vst [vmem:[%s2810_s20 + $0xc8] sm:$0xff] %v2035_v52   ;;  %v1032_v57 = vadd.f32 %v2176_v55, %v2798_v40  ;;  %v1064_v58 = vadd.f32 %v2208_v56, %v2798_v40  ;;  %v835_v59 = vpop.f32.mrb[21].mxu0  ;;  %v963_v60 = vpop.f32.mrb[21].mxu1 }
 0x18d   : > { %2074 = vst [vmem:[%s2810_s20 + $0x40] sm:$0xff] %v1950_v53   ;;  %2090 = vst [vmem:[%s2810_s20 + $0xc0] sm:$0xff] %v2030_v54   ;;  %v1030_v61 = vadd.f32 %v2798_v40, %v835_v59  ;;  %v1062_v62 = vadd.f32 %v2798_v40, %v963_v60  ;;  %v2177_v63 = vpop.f32.mrb[22].mxu0  ;;  %v2209_v0 = vpop.f32.mrb[22].mxu1 }
 0x18e   : > { %v1033_v1 = vadd.f32 %v2177_v63, %v2798_v40  ;;  %v1065_v2 = vadd.f32 %v2209_v0, %v2798_v40  ;;  %v838_v3 = vpop.f32.mrb[23].mxu0  ;;  %v966_v4 = vpop.f32.mrb[23].mxu1  ;;  %v1227_v7 = vmax.f32 %v1032_v57, 0.0  ;;  %v1259_v8 = vmax.f32 %v1064_v58, 0.0 }
 0x18f   : > { %v1031_v5 = vadd.f32 %v2798_v40, %v838_v3  ;;  %v1063_v6 = vadd.f32 %v2798_v40, %v966_v4  ;;  %v1225_v11 = vmax.f32 %v1030_v61, 0.0  ;;  %v1257_v12 = vmax.f32 %v1062_v62, 0.0 }
 0x190   : > { %v1228_v9 = vmax.f32 %v1033_v1, 0.0  ;;  %v1260_v10 = vmax.f32 %v1065_v2, 0.0 }
 0x191   : > { %v1226_v13 = vmax.f32 %v1031_v5, 0.0  ;;  %v1258_v14 = vmax.f32 %v1063_v6, 0.0 }
 0x192   : > { %v1965_v15 = vpack.c.bf16 %v1228_v9, %v1227_v7  ;;  %v2045_v16 = vpack.c.bf16 %v1260_v10, %v1259_v8 }
 0x193   : > { %v1960_v17 = vpack.c.bf16 %v1226_v13, %v1225_v11  ;;  %v2040_v18 = vpack.c.bf16 %v1258_v14, %v1257_v12  ;;  %v2180_v19 = vpop.f32.mrb[24].mxu0  ;;  %v2212_v20 = vpop.f32.mrb[24].mxu1 }
 0x194   : > { %2077 = vst [vmem:[%s2810_s20 + $0x58] sm:$0xff] %v1965_v15   ;;  %2093 = vst [vmem:[%s2810_s20 + $0xd8] sm:$0xff] %v2045_v16   ;;  %v1036_v21 = vadd.f32 %v2180_v19, %v2798_v40  ;;  %v1068_v22 = vadd.f32 %v2212_v20, %v2798_v40  ;;  %v851_v23 = vpop.f32.mrb[25].mxu0  ;;  %v979_v24 = vpop.f32.mrb[25].mxu1 }
 0x195   : > { %2076 = vst [vmem:[%s2810_s20 + $0x50] sm:$0xff] %v1960_v17   ;;  %2092 = vst [vmem:[%s2810_s20 + $0xd0] sm:$0xff] %v2040_v18   ;;  %v1034_v25 = vadd.f32 %v2798_v40, %v851_v23  ;;  %v1066_v26 = vadd.f32 %v2798_v40, %v979_v24  ;;  %v2181_v27 = vpop.f32.mrb[26].mxu0  ;;  %v2213_v28 = vpop.f32.mrb[26].mxu1 }
 0x196   : > { %v1037_v29 = vadd.f32 %v2181_v27, %v2798_v40  ;;  %v1069_v30 = vadd.f32 %v2213_v28, %v2798_v40  ;;  %v854_v31 = vpop.f32.mrb[27].mxu0  ;;  %v982_v32 = vpop.f32.mrb[27].mxu1  ;;  %v1231_v35 = vmax.f32 %v1036_v21, 0.0  ;;  %v1263_v36 = vmax.f32 %v1068_v22, 0.0 }
 0x197   : > { %v1035_v33 = vadd.f32 %v2798_v40, %v854_v31  ;;  %v1067_v34 = vadd.f32 %v2798_v40, %v982_v32  ;;  %v1229_v39 = vmax.f32 %v1034_v25, 0.0  ;;  %v1261_v41 = vmax.f32 %v1066_v26, 0.0 }
 0x198   : > { %v1232_v37 = vmax.f32 %v1037_v29, 0.0  ;;  %v1264_v38 = vmax.f32 %v1069_v30, 0.0 }
 0x199   : > { %v1230_v42 = vmax.f32 %v1035_v33, 0.0  ;;  %v1262_v43 = vmax.f32 %v1067_v34, 0.0 }
 0x19a   : > { %v1975_v44 = vpack.c.bf16 %v1232_v37, %v1231_v35  ;;  %v2055_v45 = vpack.c.bf16 %v1264_v38, %v1263_v36 }
 0x19b   : > { %v1970_v46 = vpack.c.bf16 %v1230_v42, %v1229_v39  ;;  %v2050_v47 = vpack.c.bf16 %v1262_v43, %v1261_v41  ;;  %v2184_v48 = vpop.f32.mrb[28].mxu0  ;;  %v2216_v49 = vpop.f32.mrb[28].mxu1 }
 0x19c   : > { %2079 = vst [vmem:[%s2810_s20 + $0x68] sm:$0xff] %v1975_v44   ;;  %2095 = vst [vmem:[%s2810_s20 + $0xe8] sm:$0xff] %v2055_v45   ;;  %v1040_v50 = vadd.f32 %v2184_v48, %v2798_v40  ;;  %v1072_v51 = vadd.f32 %v2216_v49, %v2798_v40  ;;  %v867_v52 = vpop.f32.mrb[29].mxu0  ;;  %v995_v53 = vpop.f32.mrb[29].mxu1 }
 0x19d   : > { %2078 = vst [vmem:[%s2810_s20 + $0x60] sm:$0xff] %v1970_v46   ;;  %2094 = vst [vmem:[%s2810_s20 + $0xe0] sm:$0xff] %v2050_v47   ;;  %v1038_v54 = vadd.f32 %v2798_v40, %v867_v52  ;;  %v1070_v55 = vadd.f32 %v2798_v40, %v995_v53  ;;  %v2185_v56 = vpop.f32.mrb[30].mxu0  ;;  %v2217_v57 = vpop.f32.mrb[30].mxu1 }
 0x19e   : > { %v1041_v58 = vadd.f32 %v2185_v56, %v2798_v40  ;;  %v1073_v59 = vadd.f32 %v2217_v57, %v2798_v40  ;;  %v870_v60 = vpop.f32.mrb[31].mxu0  ;;  %v998_v61 = vpop.f32.mrb[31].mxu1  ;;  %v1235_v0 = vmax.f32 %v1040_v50, 0.0  ;;  %v1267_v1 = vmax.f32 %v1072_v51, 0.0 }
 0x19f   : > { %v1039_v62 = vadd.f32 %v2798_v40, %v870_v60  ;;  %v1071_v63 = vadd.f32 %v2798_v40, %v998_v61  ;;  %v1233_v4 = vmax.f32 %v1038_v54, 0.0  ;;  %v1265_v5 = vmax.f32 %v1070_v55, 0.0 }
 0x1a0   : > { %v1236_v2 = vmax.f32 %v1041_v58, 0.0  ;;  %v1268_v3 = vmax.f32 %v1073_v59, 0.0 }
 0x1a1   : > { %v1234_v6 = vmax.f32 %v1039_v62, 0.0  ;;  %v1266_v7 = vmax.f32 %v1071_v63, 0.0 }
 0x1a2   : > { %v1985_v8 = vpack.c.bf16 %v1236_v2, %v1235_v0  ;;  %v2065_v9 = vpack.c.bf16 %v1268_v3, %v1267_v1 }
 0x1a3   : > { %v1980_v40 = vpack.c.bf16 %v1234_v6, %v1233_v4  ;;  %v2060_v10 = vpack.c.bf16 %v1266_v7, %v1265_v5 }
 0x1a4   : > { %2081 = vst [vmem:[%s2810_s20 + $0x78] sm:$0xff] %v1985_v8   ;;  %2097 = vst [vmem:[%s2810_s20 + $0xf8] sm:$0xff] %v2065_v9  }
 0x1a5   : > { %2080 = vst [vmem:[%s2810_s20 + $0x70] sm:$0xff] %v1980_v40   ;;  %2096 = vst [vmem:[%s2810_s20 + $0xf0] sm:$0xff] %v2060_v10  }
 0x1a6   : > { %2460 = shalt.err (!%p2457_p5)
}
 0x1a7   : > { %s2461_s21 = scalar_lea.hbm %s2901_s15, 4096  ;;  %s2465_s5 = scalar_lea.hbm %s2958_s3, 147456 }
 0x1a8   : > { %p2462_p9 = scmp.ne.s32.totalorder %s2901_s15, %s2461_s21  ;;  %p2466_p3 = scmp.lt.u32.totalorder %s2901_s15, %s2958_s3 }
 0x1a9   : > { %p2467_p7 = scmp.lt.u32.totalorder %s2465_s5, %s2461_s21  ;;  %p2469_p2 = scmp.lt.u32.totalorder %s2461_s21, %s2901_s15 }
 0x1aa   : > { %p2463_p12 = pnand %p2462_p9, %p2692_p11 }
 0x1ab   : > { %p2468_p10 = por %p2467_p7, %p2466_p3 }
 0x1ac   : > { %p2464_p1 = pneg %p2463_p12 }
 0x1ad   : > { %p2470_p4 = por %p2469_p2, %p2468_p10 }
 0x1af   : > { %p2471_p6 = pnand %p2470_p4, %p2464_p1 }
 0x1b1   : > { %2474 = shalt.err (!%p2471_p6)
}
 0x1b2   : > { %s2541_s20 = smov 64   ;;  %s2542_s22 = smov 4  }
 0x1b3   : > { %2244 = dma.vmem_to_hbm [thread:$0]  (%p2692_p11), %s2903_s24, 4096, %s2901_s15, %s1590_s26, %s2541_s20, %s2541_s20, %s2542_s22  }
 0x1b4 PF: > { %p2266_p8 = scmp.ge.s32.totalorder %s2533_s17, 2  ;;  %s1619_s11 = sand.u32 1, %s2513_s12  }
 0x1b5   : > { %p2975_p13 = scmp.ne.s32.totalorder %s2966_s23, 0  ;;  %s1620_s18 = scalar_lea.sflag [#allocation5], %s1619_s11 }
 0x1b7   : > { %p2258_p0 = pnand %p2266_p8, %p2975_p13 }
 0x1b9   : > { %2508 = dma.done.wait (!%p2258_p0), %s1620_s18, 4096  }
 0x1ba   : > { %2510 = vsyncadd (!%p2258_p0), %s1620_s18, 4294963200  ;;  %s20_s17 = sadd.s32 1, %s2533_s17   ;;  %s2976_s12 = smov %s2517_s13 }
 0x1bb   : > { %p17_p5 = scmp.ge.s32.totalorder %s20_s17, 38   ;;  %s2977_s13 = smov %s2521_s14 }
 0x1bc   : > { %s2978_s14 = smov %s2701_s6  ;;  %s2979_s15 = smov %s2529_s16 }
 0x1bd   : > { %s2980_s16 = smov %s2982_s25  ;;  %19 = sbr.rel (!%p17_p5) target bundleno = 7 (0x7), region = 95 }
 0x1c4   :  { %1625 = vsyncpa [#allocation4], 1 }
 0x1c5   :  { %1627 = vsyncpa [#allocation4 + $0x1], 1 }
 0x1c6   :  { %1628 = vsyncpa [#allocation7], 1 }
 0x1c7   :  { %1629 = vsyncpa [#allocation5], 1 }
 0x1c8   :  { %1631 = vsyncpa [#allocation5 + $0x1], 1 }

</bundles_post_ra>
